<compile_context>
chip_gen: v7x
topology: tpu7x:2x2x1
jax: 0.10.0
libtpu: 0.0.40
codegen_flags: <defaults>
</compile_context>

<pallas_src>
import jax
import jax.numpy as jnp
import numpy as np
from jax.experimental import pallas as pl
from jax.experimental.pallas import tpu as pltpu

_LANE = 128
_SUBLANE = 8
_MAX_BLOCK_ROWS = 4096                  # 512 (8,128) tiles = 2 MiB f32 per input per step
_VMEM_LIMIT_BYTES = 32 * 1024 * 1024    # safe on v5e/v6e (128 MiB) and v7x (64 MiB)
_MIN_PALLAS_BYTES = 256 * 1024          # below this, fused XLA wins (dispatch-bound)


def _cdiv(a: int, b: int) -> int:
    return -(-a // b)


def _round_up(x: int, m: int) -> int:
    return ((x + m - 1) // m) * m


def _make_fused_kernel(block_rows_x, n_x_rows, mask_x,
                       block_rows_lat, n_lat_rows, mask_lat):
    """Fused per-block partial sums of (recon-x)^2 and (1 + lv - mu^2 - exp(lv)).

    Each grid step writes one lane-dense (1, 8, 128) partial-sum tile per stream
    (pure VPU work, no cross-lane reduce, disjoint outputs -> safe 'parallel').
    """

    def kernel(rx_ref, x_ref, mu_ref, lv_ref, mse_out_ref, kl_out_ref):
        i = pl.program_id(0)

        # ---- reconstruction MSE stream -------------------------------------
        d = rx_ref[...].astype(jnp.float32) - x_ref[...].astype(jnp.float32)
        sq = d * d
        if mask_x:  # static: only emitted when the last block is ragged / OOB
            rows = (jax.lax.broadcasted_iota(jnp.int32, (block_rows_x, _LANE), 0)
                    + i * block_rows_x)
            sq = jnp.where(rows < n_x_rows, sq, 0.0)  # zero whole term, not inputs
        mse_out_ref[...] = jnp.sum(
            sq.reshape(block_rows_x // _SUBLANE, _SUBLANE, _LANE),
            axis=0, keepdims=True)

        # ---- KL stream ------------------------------------------------------
        mu = mu_ref[...].astype(jnp.float32)
        lv = lv_ref[...].astype(jnp.float32)
        term = 1.0 + lv - mu * mu - jnp.exp(lv)   # exp -> EUP slot (free)
        if mask_lat:
            rows = (jax.lax.broadcasted_iota(jnp.int32, (block_rows_lat, _LANE), 0)
                    + i * block_rows_lat)
            term = jnp.where(rows < n_lat_rows, term, 0.0)
        kl_out_ref[...] = jnp.sum(
            term.reshape(block_rows_lat // _SUBLANE, _SUBLANE, _LANE),
            axis=0, keepdims=True)

    return kernel


def _vae_loss_xla(recon_x, x, mu, logvar, beta):
    """Pure-XLA fast path for tiny / lane-misaligned inputs."""
    recon = jnp.mean((recon_x.astype(jnp.float32) - x.astype(jnp.float32)) ** 2)
    lv = logvar.astype(jnp.float32)
    m = mu.astype(jnp.float32)
    kld = -0.5 * jnp.mean(1.0 + lv - m * m - jnp.exp(lv))
    return recon + jnp.float32(beta) * kld


def vae_loss(recon_x, x, mu, logvar, beta: float = 1.0,
             *, min_pallas_bytes: int = _MIN_PALLAS_BYTES):
    """Pallas implementation of VAELoss.forward.

    recon_x, x : (N, C, H, W)
    mu, logvar : (N, latent_dim, H, W)  (the mu/logvar stashed by VAE.forward)
    returns    : scalar float32 loss
    """
    assert recon_x.shape == x.shape
    assert mu.shape == logvar.shape

    n_x = int(np.prod(x.shape))
    n_lat = int(np.prod(mu.shape))
    if n_x == 0 or n_lat == 0:
        raise ValueError("vae_loss: mean over zero elements is undefined.")

    total_bytes = sum(int(np.prod(a.shape)) * a.dtype.itemsize
                      for a in (recon_x, x, mu, logvar))
    # Fast path: tiny inputs are dispatch-bound; also used as a fallback when an
    # element count is not a multiple of 128 (a Pallas path would need a pad copy).
    if total_bytes < min_pallas_bytes or (n_x % _LANE) or (n_lat % _LANE):
        return _vae_loss_xla(recon_x, x, mu, logvar, beta)

    rows_x = n_x // _LANE
    rows_lat = n_lat // _LANE

    # Common grid for both streams: >= 2 (even) steps so v7x megacore can shard
    # the "parallel" axis; per-stream block <= 2 MiB f32 (512 tiles).
    num_blocks = max(2, _cdiv(rows_x, _MAX_BLOCK_ROWS),
                     _cdiv(rows_lat, _MAX_BLOCK_ROWS))
    num_blocks += num_blocks % 2

    block_rows_x = max(_SUBLANE, _round_up(_cdiv(rows_x, num_blocks), _SUBLANE))
    block_rows_lat = max(_SUBLANE, _round_up(_cdiv(rows_lat, num_blocks), _SUBLANE))
    mask_x = block_rows_x * num_blocks != rows_x
    mask_lat = block_rows_lat * num_blocks != rows_lat

    # Clamp block indices so grid steps whose window starts past the end of a
    # (shorter) stream still read in-bounds data; their contribution is masked.
    x_last_blk = _cdiv(rows_x, block_rows_x) - 1
    lat_last_blk = _cdiv(rows_lat, block_rows_lat) - 1
    x_map = lambda i: (jnp.minimum(i, x_last_blk), 0)
    lat_map = lambda i: (jnp.minimum(i, lat_last_blk), 0)

    # Free, contiguous reshapes to lane-dense slabs (no HBM copies).
    rx2 = recon_x.reshape(rows_x, _LANE)
    x2 = x.reshape(rows_x, _LANE)
    mu2 = mu.reshape(rows_lat, _LANE)
    lv2 = logvar.reshape(rows_lat, _LANE)

    kernel = _make_fused_kernel(block_rows_x, rows_x, mask_x,
                                block_rows_lat, rows_lat, mask_lat)

    out_bytes = 2 * num_blocks * _SUBLANE * _LANE * 4
    cost = pl.CostEstimate(flops=3 * n_x + 6 * n_lat,
                           transcendentals=n_lat,
                           bytes_accessed=total_bytes + out_bytes)

    mse_parts, kl_parts = pl.pallas_call(
        kernel,
        out_shape=(
            jax.ShapeDtypeStruct((num_blocks, _SUBLANE, _LANE), jnp.float32),
            jax.ShapeDtypeStruct((num_blocks, _SUBLANE, _LANE), jnp.float32),
        ),
        grid=(num_blocks,),
        in_specs=[
            pl.BlockSpec((block_rows_x, _LANE), x_map),
            pl.BlockSpec((block_rows_x, _LANE), x_map),
            pl.BlockSpec((block_rows_lat, _LANE), lat_map),
            pl.BlockSpec((block_rows_lat, _LANE), lat_map),
        ],
        out_specs=(
            pl.BlockSpec((1, _SUBLANE, _LANE), lambda i: (i, 0, 0)),
            pl.BlockSpec((1, _SUBLANE, _LANE), lambda i: (i, 0, 0)),
        ),
        compiler_params=pltpu.CompilerParams(
            dimension_semantics=("parallel",),
            vmem_limit_bytes=_VMEM_LIMIT_BYTES,
        ),
        cost_estimate=cost,
    )(rx2, x2, mu2, lv2)

    # Tiny final cross-block / cross-lane reduce in plain JAX (num_blocks * 4 KiB).
    recon_loss = jnp.sum(mse_parts, dtype=jnp.float32) / float(n_x)
    kld_loss = -0.5 * jnp.sum(kl_parts, dtype=jnp.float32) / float(n_lat)
    return recon_loss + jnp.float32(beta) * kld_loss


def vae_loss_ref(recon_x, x, mu, logvar, beta: float = 1.0):
    """Pure-JAX reference mirroring the PyTorch module."""
    recon_loss = jnp.mean((recon_x.astype(jnp.float32) - x.astype(jnp.float32)) ** 2)
    kld = -0.5 * jnp.mean(1.0 + logvar - mu ** 2 - jnp.exp(logvar))
    return recon_loss + beta * kld


if __name__ == "__main__":
    key = jax.random.PRNGKey(0)
    k1, k2, k3, k4 = jax.random.split(key, 4)

    # Shapes consistent with the VAE forward:
    #   x / recon_x: (batch=2, in_ch=4, 16, 16)   (decoder ends in Sigmoid -> (0,1))
    #   mu / logvar: (batch=2, latent_dim=8, 16, 16)
    N, C, H, W = 2, 4, 16, 16
    L = 8
    beta = 1.0

    x = jax.random.uniform(k1, (N, C, H, W), dtype=jnp.float32)
    recon_x = jax.random.uniform(k2, (N, C, H, W), dtype=jnp.float32)
    mu = 0.5 * jax.random.normal(k3, (N, L, H, W), dtype=jnp.float32)
    logvar = 0.1 * jax.random.normal(k4, (N, L, H, W), dtype=jnp.float32)

    # Force the Pallas path (the default small-input fast path would bypass it
    # at these tiny test sizes).
    loss = jax.block_until_ready(
        vae_loss(recon_x, x, mu, logvar, beta=beta, min_pallas_bytes=0))
    ref = jax.block_until_ready(vae_loss_ref(recon_x, x, mu, logvar, beta=beta))
    np.testing.assert_allclose(np.asarray(loss), np.asarray(ref), rtol=1e-5, atol=1e-5)

    # Also sanity-check the default (fast-path) entry point.
    loss_fast = jax.block_until_ready(vae_loss(recon_x, x, mu, logvar, beta=beta))
    np.testing.assert_allclose(np.asarray(loss_fast), np.asarray(ref), rtol=1e-5, atol=1e-5)

    print("KERNEL_OK")
</pallas_src>

<mosaic_0001>
module attributes {stable_mosaic.version = 11 : i64} {
  func.func @kernel(%arg0: i32, %arg1: memref<8x128xf32, #tpu.memory_space<vmem>>, %arg2: memref<8x128xf32, #tpu.memory_space<vmem>>, %arg3: memref<16x128xf32, #tpu.memory_space<vmem>>, %arg4: memref<16x128xf32, #tpu.memory_space<vmem>>, %arg5: memref<1x8x128xf32, #tpu.memory_space<vmem>>, %arg6: memref<1x8x128xf32, #tpu.memory_space<vmem>>) attributes {dimension_semantics = [#tpu.dimension_semantics<parallel>], iteration_bounds = array<i64: 2>, scalar_prefetch = 0 : i64, scratch_operands = 0 : i64, tpu.core_type = #tpu.core_type<tc>, window_params = [{transform_indices = @transform_0, window_bounds = array<i64: 8, 128>}, {transform_indices = @transform_1, window_bounds = array<i64: 8, 128>}, {transform_indices = @transform_2, window_bounds = array<i64: 16, 128>}, {transform_indices = @transform_3, window_bounds = array<i64: 16, 128>}, {transform_indices = @transform_4, window_bounds = array<i64: 1, 8, 128>}, {transform_indices = @transform_5, window_bounds = array<i64: 1, 8, 128>}]} {
    %c0 = arith.constant 0 : index
    %c0_0 = arith.constant 0 : index
    %0 = vector.load %arg1[%c0, %c0_0] : memref<8x128xf32, #tpu.memory_space<vmem>>, vector<8x128xf32>
    %c0_1 = arith.constant 0 : index
    %c0_2 = arith.constant 0 : index
    %1 = vector.load %arg2[%c0_1, %c0_2] : memref<8x128xf32, #tpu.memory_space<vmem>>, vector<8x128xf32>
    %2 = arith.subf %0, %1 : vector<8x128xf32>
    %3 = arith.mulf %2, %2 : vector<8x128xf32>
    %4 = vector.shape_cast %3 : vector<8x128xf32> to vector<1x8x128xf32>
    %cst = arith.constant dense<0.000000e+00> : vector<8x128xf32>
    %5 = vector.multi_reduction <add>, %4, %cst [0] : vector<1x8x128xf32> to vector<8x128xf32>
    %6 = vector.shape_cast %5 : vector<8x128xf32> to vector<1x8x128xf32>
    %c0_3 = arith.constant 0 : index
    %c0_4 = arith.constant 0 : index
    %c0_5 = arith.constant 0 : index
    %7 = vector.load %arg5[%c0_3, %c0_4, %c0_5] : memref<1x8x128xf32, #tpu.memory_space<vmem>>, vector<1x8x128xf32>
    tpu.vector_store %arg5[%c0_3, %c0_4, %c0_5], %6 {strides = array<i32>} : memref<1x8x128xf32, #tpu.memory_space<vmem>>, vector<1x8x128xf32>,
    %c0_6 = arith.constant 0 : index
    %c0_7 = arith.constant 0 : index
    %8 = vector.load %arg3[%c0_6, %c0_7] : memref<16x128xf32, #tpu.memory_space<vmem>>, vector<16x128xf32>
    %c0_8 = arith.constant 0 : index
    %c0_9 = arith.constant 0 : index
    %9 = vector.load %arg4[%c0_8, %c0_9] : memref<16x128xf32, #tpu.memory_space<vmem>>, vector<16x128xf32>
    %cst_10 = arith.constant 1.000000e+00 : f32
    %10 = vector.broadcast %cst_10 : f32 to vector<16x128xf32>
    %11 = arith.addf %10, %9 : vector<16x128xf32>
    %12 = arith.mulf %8, %8 : vector<16x128xf32>
    %13 = arith.subf %11, %12 : vector<16x128xf32>
    %14 = math.exp %9 : vector<16x128xf32>
    %15 = arith.subf %13, %14 : vector<16x128xf32>
    %16 = vector.shape_cast %15 : vector<16x128xf32> to vector<2x8x128xf32>
    %cst_11 = arith.constant dense<0.000000e+00> : vector<8x128xf32>
    %17 = vector.multi_reduction <add>, %16, %cst_11 [0] : vector<2x8x128xf32> to vector<8x128xf32>
    %18 = vector.shape_cast %17 : vector<8x128xf32> to vector<1x8x128xf32>
    %c0_12 = arith.constant 0 : index
    %c0_13 = arith.constant 0 : index
    %c0_14 = arith.constant 0 : index
    %19 = vector.load %arg6[%c0_12, %c0_13, %c0_14] : memref<1x8x128xf32, #tpu.memory_space<vmem>>, vector<1x8x128xf32>
    tpu.vector_store %arg6[%c0_12, %c0_13, %c0_14], %18 {strides = array<i32>} : memref<1x8x128xf32, #tpu.memory_space<vmem>>, vector<1x8x128xf32>,
    return
  }
  func.func @transform_0(%arg0: i32) -> (i32, i32) {
    %c1_i32 = arith.constant 1 : i32
    %0 = arith.minsi %arg0, %c1_i32 : i32
    %c0_i32 = arith.constant 0 : i32
    %c0_i32_0 = arith.constant 0 : i32
    return %0, %c0_i32 : i32, i32
  }
  func.func @transform_1(%arg0: i32) -> (i32, i32) {
    %c1_i32 = arith.constant 1 : i32
    %0 = arith.minsi %arg0, %c1_i32 : i32
    %c0_i32 = arith.constant 0 : i32
    %c0_i32_0 = arith.constant 0 : i32
    return %0, %c0_i32 : i32, i32
  }
  func.func @transform_2(%arg0: i32) -> (i32, i32) {
    %c1_i32 = arith.constant 1 : i32
    %0 = arith.minsi %arg0, %c1_i32 : i32
    %c0_i32 = arith.constant 0 : i32
    %c0_i32_0 = arith.constant 0 : i32
    return %0, %c0_i32 : i32, i32
  }
  func.func @transform_3(%arg0: i32) -> (i32, i32) {
    %c1_i32 = arith.constant 1 : i32
    %0 = arith.minsi %arg0, %c1_i32 : i32
    %c0_i32 = arith.constant 0 : i32
    %c0_i32_0 = arith.constant 0 : i32
    return %0, %c0_i32 : i32, i32
  }
  func.func @transform_4(%arg0: i32) -> (i32, i32, i32) {
    %c0_i32 = arith.constant 0 : i32
    %c0_i32_0 = arith.constant 0 : i32
    %c0_i32_1 = arith.constant 0 : i32
    return %arg0, %c0_i32, %c0_i32_0 : i32, i32, i32
  }
  func.func @transform_5(%arg0: i32) -> (i32, i32, i32) {
    %c0_i32 = arith.constant 0 : i32
    %c0_i32_0 = arith.constant 0 : i32
    %c0_i32_1 = arith.constant 0 : i32
    return %arg0, %c0_i32, %c0_i32_0 : i32, i32, i32
  }
}

</mosaic_0001>

<bundles_post_ra>
// kernel: tpu_custom_call.1
= control target key start
LH: loop header
LB: loop body
LE: loop exit
PB: predicated region body
PF: predicated region fallthrough
CT: control target
= control target key end

     0   :  { %s1400_s0 = inlined_call_operand.hbm [shape: f32[16,128], index: 0, kind: input, shape index: {}]   ;;  %s1401_s1 = inlined_call_operand.hbm [shape: f32[16,128], index: 1, kind: input, shape index: {}]   ;;  %s1402_s2 = inlined_call_operand.hbm [shape: f32[32,128], index: 2, kind: input, shape index: {}]   ;;  %s1403_s3 = inlined_call_operand.hbm [shape: f32[32,128], index: 3, kind: input, shape index: {}]   ;;  %s1404_s4 = inlined_call_operand.hbm [shape: f32[2,8,128], index: 4, kind: output, shape index: {0}]   ;;  %s1405_s5 = inlined_call_operand.hbm [shape: f32[2,8,128], index: 5, kind: output, shape index: {1}]  }
   0x1   :  { %1416 = sst [smem:[#allocation23_spill]] %s1400_s0 }
   0x2   :  { %1417 = sst [smem:[#allocation24_spill]] %s1401_s1 }
   0x3   :  { %11 = vsyncpa [#allocation3], 0 }
   0x4   :  { %13 = vsyncpa [#allocation3 + $0x1], 0 }
   0x5   :  { %14 = vsyncpa [#allocation6], 0 }
   0x6   :  { %16 = vsyncpa [#allocation6 + $0x1], 0 }
   0x7   :  { %17 = vsyncpa [#allocation9], 0 }
   0x8   :  { %19 = vsyncpa [#allocation9 + $0x1], 0 }
   0x9   :  { %20 = vsyncpa [#allocation4], 0 }
   0xa   :  { %22 = vsyncpa [#allocation4 + $0x1], 0 }
   0xb   :  { %23 = vsyncpa [#allocation12], 0 }
   0xc   :  { %25 = vsyncpa [#allocation12 + $0x1], 0  ;;  %s1037_s18 = smov 0   ;;  %s1039_s19 = smov 0  }
   0xd   :  { %s1041_s20 = smov 0   ;;  %s1043_s21 = smov 0  }
   0xe   :  { %s1045_s22 = smov 0   ;;  %s1047_s23 = smov 0  }
   0xf   :  { %s1049_s24 = smov 0  }
  0x10 LB: > { %1418 = sst [smem:[#allocation18_spill]] %s981_s20  ;;  %s1071_s25 = sadd.s32 4294967295, %s997_s24   ;;  %s997_s24 = sphi %s1049_s24, %s1443_s24   ;;  %s993_s23 = sphi %s1047_s23, %s1447_s23   ;;  %s989_s22 = sphi %s1045_s22, %s1451_s22   ;;  %s985_s21 = sphi %s1043_s21, %s1450_s21   ;;  %s981_s20 = sphi %s1041_s20, %s1445_s20   ;;  %s977_s19 = sphi %s1039_s19, %s1449_s19   ;;  %s973_s18 = sphi %s1037_s18, %s1448_s18  }
  0x11   : > { %1419 = sst [smem:[#allocation19_spill]] %s993_s23  ;;  %s623_s26 = sadd.s32 4294967294, %s997_s24  }
  0x12   : > { %s1075_s27 = sadd.s32 1, %s997_s24   ;;  %p35_p0 = scmp.lt.s32.totalorder %s997_s24, 1 }
  0x13   : > { %1420 = sst [smem:[#allocation20_spill]] %s1075_s27  ;;  %p37_p1 = scmp.lt.s32.totalorder %s1075_s27, 1 }
  0x14   : > { %s42_s28 = sadd.s32 1, %s993_s23  ;;  %p49_p2 = scmp.ne.s32.totalorder %s993_s23, %s989_s22 }
  0x15   : > { %s1081_s29 = scalar_select %p35_p0, %s997_s24, 1 }
  0x16   : > { %s38_s30 = scalar_select %p37_p1, %s1075_s27, 1 }
  0x17   : > { %p50_p3 = scmp.eq.s32.totalorder %s997_s24, 0  ;;  %p55_p4 = scmp.ne.s32.totalorder %s989_s22, %s985_s21 }
  0x18   : > { %s39_s6 = ssub.s32 %s1081_s29, %s38_s30  ;;  %p56_p7 = scmp.eq.s32.totalorder %s1071_s25, 0 }
  0x19   : > { %p40_p5 = scmp.eq.s32.totalorder %s39_s6, 0  ;;  %p1089_p6 = por %p50_p3, %p49_p2 }
  0x1a   : > { %s155_s8 = ssub.s32 %s997_s24, %s1075_s27  ;;  %p1099_p8 = por %p56_p7, %p55_p4 }
  0x1b   : > { %s1097_s9 = scalar_select %p40_p5, %s993_s23, %s42_s28  }
  0x1c   : > { %s1423_s10 = scalar_select %p1099_p8, 1, 0 }
  0x1d   : > { %1422 = sst [smem:[#allocation21_spill]] %s1097_s9  ;;  %p156_p9 = scmp.eq.s32.totalorder %s155_s8, 0 }
  0x1e   : > { %s158_s11 = sadd.s32 1, %s981_s20  ;;  %p168_p10 = scmp.ne.s32.totalorder %s981_s20, %s977_s19 }
  0x1f   : > { %s1107_s12 = scalar_select %p156_p9, %s981_s20, %s158_s11  }
  0x20   : > { %p169_p11 = scmp.eq.s32.totalorder %s1071_s25, 1  ;;  %p174_p12 = scmp.ne.s32.totalorder %s977_s19, %s973_s18 }
  0x21   : > { %1424 = sst [smem:[#allocation22_spill]] %s1107_s12  ;;  %p175_p13 = scmp.eq.s32.totalorder %s623_s26, 1 }
  0x22   : > { %p1113_p1 = por %p169_p11, %p168_p10  ;;  %p683_p2 = scmp.lt.s32.totalorder %s997_s24, 2 }
  0x23   : > { %p1118_p3 = por %p175_p13, %p174_p12  ;;  %s1123_s15 = sand.u32 1, %s993_s23  }
  0x24   : > { %s1425_s13 = scalar_select %p1113_p1, 1, 0 }
  0x25   : > { %s1426_s14 = scalar_select %p1118_p3, 1, 0 }
  0x26   : > { %s1407_s16 = sshll.u32 %s1123_s15, 3  ;;  %s1408_s17 = sshll.u32 %s1081_s29, 7 }
  0x27   : > { %p1129_p4 = pnand %p683_p2, %p1089_p6  ;;  %s241_s26 = sand.u32 1, %s997_s24  }
  0x28   : > { %s1428_s1 = sld [smem:[#allocation24_spill]]  ;;  %s245_s8 = scalar_lea.vmem [#allocation5], %s1407_s16 }
  0x29   : > { %s1427_s21 = scalar_select %p1129_p4, 1, 0 }
  0x2a   : > { %s254_s11 = sshll.u32 %s245_s8, 4  ;;  %s1147_s9 = scalar_lea.sflag [#allocation6], %s241_s26  ;;  %s1144_s11 = int_to_ptr.vmem [resolvable:$true] %s254_s11 }
  0x2b   : > { %p1153_p7 = pneg %p1129_p4 }
  0x2e   : > { %s1139_s6 = scalar_lea.hbm %s1428_s1, %s1408_s17  ;;  %s752_s8 = scalar_lea.hbm %s1428_s1, 256 }
  0x2f   : > { %s747_s23 = scalar_lea.hbm %s1139_s6, 128  ;;  %p753_p11 = scmp.lt.u32.totalorder %s1139_s6, %s1428_s1 }
  0x30   : > { %p748_p6 = scmp.ne.s32.totalorder %s1139_s6, %s747_s23  ;;  %p754_p12 = scmp.lt.u32.totalorder %s752_s8, %s747_s23 }
  0x31   : > { %p756_p2 = scmp.lt.u32.totalorder %s747_s23, %s1139_s6 }
  0x32   : > { %p750_p9 = pnand %p1153_p7, %p748_p6  ;;  %p755_p13 = por %p754_p12, %p753_p11 }
  0x34   : > { %p751_p10 = pneg %p750_p9  ;;  %p757_p0 = por %p756_p2, %p755_p13 }
  0x36   : > { %p758_p5 = pnand %p757_p0, %p751_p10 }
  0x38   : > { %761 = shalt.err (!%p758_p5)
}
  0x39   : > { %s762_s26 = scalar_lea.vmem %s1144_s11, 128  ;;  %s999_s16 = smov [#allocation5]  }
  0x3a   : > { %p763_p6 = scmp.ne.s32.totalorder %s1144_s11, %s762_s26  ;;  %s767_s30 = sshll.u32 %s999_s16, 4  ;;  %s768_s30 = int_to_ptr.vmem [resolvable:$false] %s767_s30 }
  0x3b   : > { %s769_s17 = scalar_lea.vmem %s768_s30, 256  ;;  %p770_p1 = scmp.lt.s32.totalorder %s1144_s11, %s768_s30 }
  0x3c   : > { %p765_p9 = pnand %p763_p6, %p1153_p7  ;;  %p771_p8 = scmp.lt.s32.totalorder %s769_s17, %s762_s26 }
  0x3e   : > { %p766_p3 = pneg %p765_p9  ;;  %p772_p11 = por %p771_p8, %p770_p1 }
  0x40   : > { %p773_p12 = pnand %p772_p11, %p766_p3 }
  0x42   : > { %776 = shalt.err (!%p773_p12)
}
  0x43   : > { %669 = dma.hbm_to_vmem [thread:$0]  (!%p1129_p4), %s1139_s6, 128, %s1144_s11, %s1147_s9  }
  0x44   : > { %p305_p0 = scmp.lt.s32.totalorder %s997_s24, 3  ;;  %s1430_s23 = sshll.u32 %s1081_s29, 7 }
  0x45   : > { %s1431_s0 = sld [smem:[#allocation23_spill]]  ;;  %p1432_p8 = scmp.ge.s32.totalorder %s997_s24, 1 }
  0x46   : > { %s1434_s30 = sshll.u32 %s1123_s15, 3  ;;  %s222_s6 = scalar_lea.sflag [#allocation3], %s1123_s15 }
  0x47   : > { %p1187_p1 = pnand %p1432_p8, %p305_p0  ;;  %s225_s17 = scalar_lea.vmem [#allocation2], %s1434_s30 }
  0x48   : > { %s234_s1 = sshll.u32 %s225_s17, 4  ;;  %s235_s1 = int_to_ptr.vmem [resolvable:$true] %s234_s1 }
  0x49   : > { %s1433_s16 = scalar_select %p1187_p1, 1, 0 }
  0x4b   : > { %s1183_s26 = scalar_lea.hbm %s1431_s0, %s1430_s23  ;;  %s782_s8 = scalar_lea.hbm %s1431_s0, 256 }
  0x4c   : > { %s777_s11 = scalar_lea.hbm %s1183_s26, 128  ;;  %p783_p13 = scmp.lt.u32.totalorder %s1183_s26, %s1431_s0 }
  0x4d   : > { %p778_p3 = scmp.ne.s32.totalorder %s1183_s26, %s777_s11  ;;  %p784_p2 = scmp.lt.u32.totalorder %s782_s8, %s777_s11 }
  0x4e   : > { %p786_p9 = scmp.lt.u32.totalorder %s777_s11, %s1183_s26 }
  0x4f   : > { %p780_p5 = pnand %p778_p3, %p1153_p7  ;;  %p785_p6 = por %p784_p2, %p783_p13 }
  0x51   : > { %p781_p10 = pneg %p780_p5  ;;  %p787_p11 = por %p786_p9, %p785_p6 }
  0x53   : > { %p788_p12 = pnand %p787_p11, %p781_p10 }
  0x55   : > { %791 = shalt.err (!%p788_p12)
}
  0x56   : > { %s792_s30 = scalar_lea.vmem %s235_s1, 128  ;;  %s1000_s17 = smov [#allocation2]  }
  0x57   : > { %p793_p0 = scmp.ne.s32.totalorder %s235_s1, %s792_s30  ;;  %s797_s27 = sshll.u32 %s1000_s17, 4  ;;  %s798_s27 = int_to_ptr.vmem [resolvable:$false] %s797_s27 }
  0x58   : > { %s799_s23 = scalar_lea.vmem %s798_s27, 256  ;;  %p800_p5 = scmp.lt.s32.totalorder %s235_s1, %s798_s27 }
  0x59   : > { %p795_p8 = pnand %p793_p0, %p1153_p7  ;;  %p801_p1 = scmp.lt.s32.totalorder %s799_s23, %s792_s30 }
  0x5b   : > { %p796_p3 = pneg %p795_p8  ;;  %p802_p4 = por %p801_p1, %p800_p5 }
  0x5d   : > { %p803_p2 = pnand %p802_p4, %p796_p3 }
  0x5f   : > { %806 = shalt.err (!%p803_p2)
}
  0x60   : > { %p1435_p13 = scmp.ne.s32.totalorder %s1427_s21, 0  ;;  %s649_s20 = sshll.u32 %s1081_s29, 8 }
  0x61   : > { %s1436_s12 = sshll.u32 %s1123_s15, 4  ;;  %s1219_s27 = scalar_lea.hbm %s1402_s2, %s649_s20 }
  0x62   : > { %666 = dma.hbm_to_vmem [thread:$0]  (!%p1435_p13), %s1183_s26, 128, %s235_s1, %s222_s6  }
  0x63   : > { %s265_s11 = scalar_lea.vmem [#allocation7], %s1436_s12  ;;  %s807_s30 = scalar_lea.hbm %s1219_s27, 256 }
  0x64   : > { %s274_s7 = sshll.u32 %s265_s11, 4  ;;  %p808_p4 = scmp.ne.s32.totalorder %s1219_s27, %s807_s30  ;;  %s1221_s7 = int_to_ptr.vmem [resolvable:$true] %s274_s7 }
  0x65   : > { %s812_s6 = scalar_lea.hbm %s1402_s2, 512  ;;  %p813_p6 = scmp.lt.u32.totalorder %s1219_s27, %s1402_s2 }
  0x66   : > { %p810_p1 = pnand %p808_p4, %p1153_p7  ;;  %p814_p9 = scmp.lt.u32.totalorder %s812_s6, %s807_s30 }
  0x67   : > { %p816_p12 = scmp.lt.u32.totalorder %s807_s30, %s1219_s27 }
  0x68   : > { %p811_p10 = pneg %p810_p1  ;;  %p815_p11 = por %p814_p9, %p813_p6 }
  0x6a   : > { %p817_p0 = por %p816_p12, %p815_p11 }
  0x6c   : > { %p818_p8 = pnand %p817_p0, %p811_p10 }
  0x6e   : > { %821 = shalt.err (!%p818_p8)
}
  0x6f   : > { %s822_s11 = scalar_lea.vmem %s1221_s7, 256  ;;  %s1001_s8 = smov [#allocation7]  }
  0x70   : > { %p823_p3 = scmp.ne.s32.totalorder %s1221_s7, %s822_s11  ;;  %s827_s17 = sshll.u32 %s1001_s8, 4  ;;  %s828_s17 = int_to_ptr.vmem [resolvable:$false] %s827_s17 }
  0x71   : > { %s829_s1 = scalar_lea.vmem %s828_s17, 512  ;;  %p830_p4 = scmp.lt.s32.totalorder %s1221_s7, %s828_s17 }
  0x72   : > { %p825_p5 = pnand %p823_p3, %p1153_p7  ;;  %p831_p1 = scmp.lt.s32.totalorder %s829_s1, %s822_s11 }
  0x74   : > { %p826_p2 = pneg %p825_p5  ;;  %p832_p6 = por %p831_p1, %p830_p4 }
  0x76   : > { %p833_p9 = pnand %p832_p6, %p826_p2 }
  0x78   : > { %836 = shalt.err (!%p833_p9)
}
  0x79   : > { %s1002_s30 = smov 128   ;;  %s1003_s26 = smov 8  }
  0x7a   : > { %672 = dma.hbm_to_vmem [thread:$0]  (!%p1435_p13), %s1219_s27, 256, %s1221_s7, %s1147_s9, %s1002_s30, %s1002_s30, %s1003_s26  }
  0x7b   : > { %s1253_s12 = scalar_lea.hbm %s1403_s3, %s649_s20  ;;  %s1437_s11 = sshll.u32 %s1123_s15, 4 }
  0x7c   : > { %s288_s8 = scalar_lea.vmem [#allocation8], %s1437_s11  ;;  %s285_s1 = scalar_lea.sflag [#allocation9], %s1123_s15 }
  0x7d   : > { %s297_s17 = sshll.u32 %s288_s8, 4  ;;  %s837_s0 = scalar_lea.hbm %s1253_s12, 256  ;;  %s1257_s17 = int_to_ptr.vmem [resolvable:$true] %s297_s17 }
  0x7e   : > { %p838_p10 = scmp.ne.s32.totalorder %s1253_s12, %s837_s0  ;;  %s842_s20 = scalar_lea.hbm %s1403_s3, 512 }
  0x7f   : > { %p843_p0 = scmp.lt.u32.totalorder %s1253_s12, %s1403_s3  ;;  %p844_p8 = scmp.lt.u32.totalorder %s842_s20, %s837_s0 }
  0x80   : > { %p840_p11 = pnand %p838_p10, %p1153_p7  ;;  %p846_p5 = scmp.lt.u32.totalorder %s837_s0, %s1253_s12 }
  0x81   : > { %p845_p3 = por %p844_p8, %p843_p0 }
  0x82   : > { %p841_p12 = pneg %p840_p11 }
  0x83   : > { %p847_p2 = por %p846_p5, %p845_p3 }
  0x85   : > { %p848_p4 = pnand %p847_p2, %p841_p12 }
  0x87   : > { %851 = shalt.err (!%p848_p4)
}
  0x88   : > { %s852_s6 = scalar_lea.vmem %s1257_s17, 256  ;;  %s1004_s23 = smov [#allocation8]  }
  0x89   : > { %p853_p1 = scmp.ne.s32.totalorder %s1257_s17, %s852_s6  ;;  %s857_s11 = sshll.u32 %s1004_s23, 4  ;;  %s858_s11 = int_to_ptr.vmem [resolvable:$false] %s857_s11 }
  0x8a   : > { %s859_s8 = scalar_lea.vmem %s858_s11, 512  ;;  %p860_p10 = scmp.lt.s32.totalorder %s1257_s17, %s858_s11 }
  0x8b   : > { %p855_p6 = pnand %p853_p1, %p1153_p7  ;;  %p861_p11 = scmp.lt.s32.totalorder %s859_s8, %s852_s6 }
  0x8d   : > { %p856_p9 = pneg %p855_p6  ;;  %p862_p0 = por %p861_p11, %p860_p10 }
  0x8f   : > { %p863_p8 = pnand %p862_p0, %p856_p9 }
  0x91   : > { %866 = shalt.err (!%p863_p8)
}
  0x92   : > { %675 = dma.hbm_to_vmem [thread:$0]  (!%p1435_p13), %s1253_s12, 256, %s1257_s17, %s285_s1, %s1002_s30, %s1002_s30, %s1003_s26  }
  0x93   : > { %p1438_p7 = scmp.ne.s32.totalorder %s1433_s16, 0 }
  0x94   : > { %s311_s0 = sand.u32 (!%p1438_p7), 1, %s989_s22   ;;  %p1439_p12 = scmp.ne.s32.totalorder (!%p1438_p7), %s1423_s10, 0 }
  0x95   : > { %309 = sbr.rel (%p1438_p7) target bundleno = 214 (0xd6), region = 36  ;;  %s637_s28 = sshll.u32 (!%p1438_p7), %s311_s0, 3 }
  0x96   : > { %s312_s29 = scalar_lea.sflag (!%p1438_p7), [#allocation3], %s311_s0  ;;  %s315_s9 = scalar_lea.vmem (!%p1438_p7), [#allocation2], %s637_s28 }
  0x9c   : > { %952 = dma.done.wait (%p1439_p12), %s312_s29, 128  }
  0x9d   : > { %954 = vsyncadd (%p1439_p12), %s312_s29, 4294967168  ;;  %s320_s15 = sand.u32 1, %s1071_s25   ;;  %s324_s20 = scalar_lea.vmem [#allocation5], %s637_s28 }
  0x9e   : > { %s321_s21 = scalar_lea.sflag [#allocation6], %s320_s15 }
  0x9f   : > { %956 = dma.done.wait (%p1439_p12), %s321_s21, 384  }
  0xa0   : > { %958 = vsyncadd (%p1439_p12), %s321_s21, 4294966912  ;;  %s639_s16 = sshll.u32 %s311_s0, 4  ;;  %s339_s26 = scalar_lea.sflag [#allocation9], %s311_s0 }
  0xa1   : > { %s333_s30 = scalar_lea.vmem [#allocation7], %s639_s16  ;;  %s342_s12 = scalar_lea.vmem [#allocation8], %s639_s16 }
  0xa2   : > { %960 = dma.done.wait (%p1439_p12), %s339_s26, 256  }
  0xa3   : > { %962 = vsyncadd (%p1439_p12), %s339_s26, 4294967040  ;;  %s1303_s17 = sand.u32 1, %s977_s19   ;;  %v399_v0 = vld [vmem:[%s315_s9] sm:$0xff]  ;;  %v400_v1 = vld [vmem:[%s324_s20] sm:$0xff]  ;;  %s645_s6 = sshll.u32 %s1071_s25, 7 }
  0xa4   : > { %s641_s1 = sshll.u32 %s1303_s17, 3  ;;  %v401_v2 = vsub.f32 %v399_v0, %v400_v1  ;;  %v407_v3 = vld [vmem:[%s342_s12] sm:$0xff]  ;;  %v408_v4 = vld [vmem:[%s342_s12 + $0x8] sm:$0xff]  ;;  %s1316_s11 = scalar_lea.hbm %s1404_s4, %s645_s6 }
  0xa5   : > { %s381_s7 = scalar_lea.vmem [#allocation10], %s641_s1  ;;  %v415_v5 = vmul.f32 1.442695, %v407_v3  ;;  %v417_v7 = vmul.f32 1.442695, %v408_v4  ;;  %v405_v8 = vld [vmem:[%s333_s30] sm:$0xff] }
  0xa6   : > { %s442_s27 = sshll.u32 %s381_s7, 4  ;;  %v402_v6 = vmul.f32 %v401_v2, %v401_v2  ;;  %v406_v9 = vld [vmem:[%s333_s30 + $0x8] sm:$0xff]  ;;  %s424_s8 = scalar_lea.sflag [#allocation4], %s1303_s17  ;;  %s1309_s27 = int_to_ptr.vmem [resolvable:$true] %s442_s27 }
  0xa7   : > { %743 = vpow2.f32 %v415_v5  ;;  %s867_s0 = scalar_lea.vmem %s1309_s27, 128  ;;  %p1440_p3 = scmp.ne.s32.totalorder %s1425_s13, 0 }
  0xa8   : > { %404 = vst [vmem:[%s381_s7] sm:$0xff] %v402_v6  ;;  %745 = vpow2.f32 %v417_v7  ;;  %p868_p13 = scmp.ne.s32.totalorder %s1309_s27, %s867_s0  ;;  %s1005_s28 = smov [#allocation10]  }
  0xa9   : > { %s871_s29 = sshll.u32 %s1005_s28, 4  ;;  %s872_s29 = int_to_ptr.vmem [resolvable:$false] %s871_s29 }
  0xaa   : > { %p869_p5 = pnand %p868_p13, %p1440_p3  ;;  %s873_s9 = scalar_lea.vmem %s872_s29, 256 }
  0xab   : > { %p874_p4 = scmp.lt.s32.totalorder %s1309_s27, %s872_s29  ;;  %p875_p1 = scmp.lt.s32.totalorder %s873_s9, %s867_s0 }
  0xac   : > { %p870_p2 = pneg %p869_p5 }
  0xad   : > { %p876_p6 = por %p875_p1, %p874_p4 }
  0xaf   : > { %p877_p9 = pnand %p876_p6, %p870_p2 }
  0xb1   : > { %880 = shalt.err (!%p877_p9)
}
  0xb2   : > { %s881_s15 = scalar_lea.hbm %s1316_s11, 128  ;;  %s885_s16 = scalar_lea.hbm %s1404_s4, 256 }
  0xb3   : > { %p882_p10 = scmp.ne.s32.totalorder %s1316_s11, %s881_s15  ;;  %p886_p8 = scmp.lt.u32.totalorder %s1316_s11, %s1404_s4 }
  0xb4   : > { %p887_p7 = scmp.lt.u32.totalorder %s885_s16, %s881_s15  ;;  %p889_p13 = scmp.lt.u32.totalorder %s881_s15, %s1316_s11 }
  0xb5   : > { %p883_p11 = pnand %p882_p10, %p1440_p3 }
  0xb6   : > { %p888_p12 = por %p887_p7, %p886_p8 }
  0xb7   : > { %p884_p0 = pneg %p883_p11 }
  0xb8   : > { %p890_p5 = por %p889_p13, %p888_p12 }
  0xba   : > { %p891_p2 = pnand %p890_p5, %p884_p0 }
  0xbc   : > { %894 = shalt.err (!%p891_p2)
}
  0xbd   : > { %659 = dma.vmem_to_hbm [thread:$0]  (%p1440_p3), %s1309_s27, 128, %s1316_s11, %s424_s8   ;;  %v409_v10 = vadd.f32 1.0, %v407_v3  ;;  %v411_v11 = vmul.f32 %v405_v8, %v405_v8  ;;  %v410_v12 = vadd.f32 1.0, %v408_v4  ;;  %v412_v13 = vmul.f32 %v406_v9, %v406_v9  ;;  %v744_v16 = vpop.eup %743 }
  0xbe   : > { %s388_s12 = scalar_lea.vmem [#allocation11], %s641_s1  ;;  %v746_v17 = vpop.eup %745  ;;  %s1349_s23 = scalar_lea.hbm %s1405_s5, %s645_s6 }
  0xbf   : > { %v413_v14 = vsub.f32 %v409_v10, %v411_v11  ;;  %v414_v15 = vsub.f32 %v410_v12, %v412_v13  ;;  %s455_s7 = sshll.u32 %s388_s12, 4  ;;  %s429_s11 = scalar_lea.sflag [#allocation12], %s1303_s17  ;;  %s1342_s7 = int_to_ptr.vmem [resolvable:$true] %s455_s7 }
  0xc0   : > { %s895_s8 = scalar_lea.vmem %s1342_s7, 128  ;;  %s1006_s1 = smov [#allocation11]  }
  0xc1   : > { %v419_v18 = vsub.f32 %v413_v14, %v744_v16  ;;  %v420_v19 = vsub.f32 %v414_v15, %v746_v17  ;;  %p896_p4 = scmp.ne.s32.totalorder %s1342_s7, %s895_s8  ;;  %s899_s0 = sshll.u32 %s1006_s1, 4  ;;  %s900_s0 = int_to_ptr.vmem [resolvable:$false] %s899_s0 }
  0xc2   : > { %s901_s28 = scalar_lea.vmem %s900_s0, 256  ;;  %p902_p9 = scmp.lt.s32.totalorder %s1342_s7, %s900_s0 }
  0xc3   : > { %v421_v20 = vadd.f32 %v420_v19, %v419_v18  ;;  %p897_p1 = pnand %p896_p4, %p1440_p3  ;;  %p903_p10 = scmp.lt.s32.totalorder %s901_s28, %s895_s8 }
  0xc5   : > { %422 = vst [vmem:[%s388_s12] sm:$0xff] %v421_v20  ;;  %p898_p6 = pneg %p897_p1  ;;  %p904_p11 = por %p903_p10, %p902_p9 }
  0xc7   : > { %p905_p0 = pnand %p904_p11, %p898_p6 }
  0xc9   : > { %908 = shalt.err (!%p905_p0)
}
  0xca   : > { %s909_s25 = scalar_lea.hbm %s1349_s23, 128  ;;  %s913_s29 = scalar_lea.hbm %s1405_s5, 256 }
  0xcb   : > { %p910_p8 = scmp.ne.s32.totalorder %s1349_s23, %s909_s25  ;;  %p914_p13 = scmp.lt.u32.totalorder %s1349_s23, %s1405_s5 }
  0xcc   : > { %p915_p5 = scmp.lt.u32.totalorder %s913_s29, %s909_s25  ;;  %p917_p4 = scmp.lt.u32.totalorder %s909_s25, %s1349_s23 }
  0xcd   : > { %p911_p7 = pnand %p910_p8, %p1440_p3 }
  0xce   : > { %p916_p2 = por %p915_p5, %p914_p13 }
  0xcf   : > { %p912_p12 = pneg %p911_p7 }
  0xd0   : > { %p918_p1 = por %p917_p4, %p916_p2 }
  0xd2   : > { %p919_p6 = pnand %p918_p1, %p912_p12 }
  0xd4   : > { %922 = shalt.err (!%p919_p6)
}
  0xd5   : > { %660 = dma.vmem_to_hbm [thread:$0]  (%p1440_p3), %s1342_s7, 128, %s1349_s23, %s429_s11  }
  0xd6 PF: > { %s467_s21 = sand.u32 1, %s973_s18   ;;  %p1441_p9 = scmp.ne.s32.totalorder %s1426_s14, 0 }
  0xd7   : > { %p1442_p10 = scmp.ge.s32.totalorder %s997_s24, 2  ;;  %s468_s20 = scalar_lea.sflag [#allocation4], %s467_s21 }
  0xd9   : > { %p677_p11 = pnand %p1442_p10, %p1441_p9 }
  0xdb   : > { %964 = dma.done.wait (!%p677_p11), %s468_s20, 128  }
  0xdc   : > { %966 = vsyncadd (!%p677_p11), %s468_s20, 4294967168  ;;  %s477_s16 = scalar_lea.sflag [#allocation12], %s467_s21 }
  0xdd   : > { %968 = dma.done.wait (!%p677_p11), %s477_s16, 128  }
  0xde   : > { %970 = vsyncadd (!%p677_p11), %s477_s16, 4294967168  ;;  %s1443_s24 = sld [smem:[#allocation20_spill]]  ;;  %s1444_s13 = sld [smem:[#allocation18_spill]] }
  0xdf   : > { %s1445_s20 = sld [smem:[#allocation22_spill]]  ;;  %s1446_s30 = sld [smem:[#allocation19_spill]] }
  0xe0   : > { %s1447_s23 = sld [smem:[#allocation21_spill]]  ;;  %s1448_s18 = smov %s977_s19 }
  0xe1   : > { %s1450_s21 = smov %s989_s22 }
  0xe4   : > { %p28_p3 = scmp.ge.s32.totalorder %s1443_s24, 4   ;;  %s1449_s19 = smov %s1444_s13 }
  0xe5   : > { %s1451_s22 = smov %s1446_s30 }
  0xe6   :  { %30 = sbr.rel (!%p28_p3) target bundleno = 16 (0x10), region = 135 }
  0xed   :  { %482 = vsyncpa [#allocation3], 1 }
  0xee   :  { %484 = vsyncpa [#allocation3 + $0x1], 1 }
  0xef   :  { %485 = vsyncpa [#allocation6], 1 }
  0xf0   :  { %487 = vsyncpa [#allocation6 + $0x1], 1 }
  0xf1   :  { %488 = vsyncpa [#allocation9], 1 }
  0xf2   :  { %490 = vsyncpa [#allocation9 + $0x1], 1 }
  0xf3   :  { %491 = vsyncpa [#allocation4], 1 }
  0xf4   :  { %493 = vsyncpa [#allocation4 + $0x1], 1 }
  0xf5   :  { %494 = vsyncpa [#allocation12], 1 }
  0xf6   :  { %496 = vsyncpa [#allocation12 + $0x1], 1 }

</bundles_post_ra>
